<compile_context>
chip_gen: v7x
topology: tpu7x:2x2x1
jax: 0.10.0
libtpu: 0.0.40
codegen_flags: <defaults>
</compile_context>

<pallas_src>
import functools

import jax
import jax.numpy as jnp
from jax.experimental import pallas as pl
from jax.experimental.pallas import tpu as pltpu

# ---- module hyper-parameters (small, consistent with the module's __init__) ----
BATCH = 8
INPUT_SIZE = 32
HIDDEN_SIZE = 32
NUM_HIDDEN_LAYERS = 2
OUTPUT_SIZE = 16

# ---- compact packed-slab layout (all widths fit in HIDDEN_SIZE lanes) ----
SLAB_LANES = HIDDEN_SIZE                               # 32-lane slab (OUTPUT_SIZE <= this)
W_IN_ROW0 = 0                                          # rows [0, INPUT_SIZE)
W_H_ROW0 = INPUT_SIZE                                  # rows [32, 32 + L*HIDDEN)
W_OUT_ROW0 = INPUT_SIZE + NUM_HIDDEN_LAYERS * HIDDEN_SIZE      # 96
BIAS_ROW0 = W_OUT_ROW0 + HIDDEN_SIZE                   # 128
BIAS_ROWS = 8                                          # padded to a full sublane group
SLAB_ROWS = BIAS_ROW0 + BIAS_ROWS                      # 136

assert INPUT_SIZE % 8 == 0 and HIDDEN_SIZE % 8 == 0
assert OUTPUT_SIZE <= SLAB_LANES


def _round_up(n, m):
    return ((n + m - 1) // m) * m


def _mlp_kernel(x_ref, p_ref, o_ref):
    """Whole-MLP forward for one batch tile.

    x_ref : [TB, INPUT_SIZE]        natural-width inputs
    p_ref : [SLAB_ROWS, SLAB_LANES] packed params (resident across the grid):
              rows [0, 32)      -> W_in
              rows [32, 96)     -> W_h[0], W_h[1]
              rows [96, 128)    -> W_out (cols [0, OUTPUT_SIZE))
              rows [128, 136)   -> biases (row 0=b_in, 1..L=b_h, L+1=b_out)
    o_ref : [TB, OUTPUT_SIZE]       natural-width logits
    """
    x = x_ref[...]
    biases = p_ref[BIAS_ROW0:BIAS_ROW0 + BIAS_ROWS, :]        # [8, 32], loaded once

    # in_layer: Linear + ReLU
    w_in = p_ref[W_IN_ROW0:W_IN_ROW0 + INPUT_SIZE, :]
    h = jnp.dot(x, w_in, preferred_element_type=jnp.float32) + biases[0:1, :]
    h = jnp.maximum(h, 0.0)

    # hidden layers: Linear + ReLU (+ Dropout == identity at eval); tiny static unroll
    for l in range(NUM_HIDDEN_LAYERS):
        r0 = W_H_ROW0 + l * HIDDEN_SIZE
        w_l = p_ref[r0:r0 + HIDDEN_SIZE, :]
        h = jnp.dot(h, w_l, preferred_element_type=jnp.float32) + biases[1 + l:2 + l, :]
        h = jnp.maximum(h, 0.0)

    # out_layer: final Linear (no activation); compute at slab width, store natural width
    w_out = p_ref[W_OUT_ROW0:W_OUT_ROW0 + HIDDEN_SIZE, :]
    out = jnp.dot(h, w_out, preferred_element_type=jnp.float32)
    out = out + biases[1 + NUM_HIDDEN_LAYERS:2 + NUM_HIDDEN_LAYERS, :]
    o_ref[...] = out[:, :OUTPUT_SIZE].astype(o_ref.dtype)


def pack_params(params):
    """Pack all weights/biases into one compact f32 slab. Call ONCE at init and reuse."""
    w_in, b_in, w_h, b_h, w_out, b_out = params
    slab = jnp.zeros((SLAB_ROWS, SLAB_LANES), jnp.float32)
    slab = slab.at[W_IN_ROW0:W_IN_ROW0 + INPUT_SIZE, :HIDDEN_SIZE].set(w_in)
    for l in range(NUM_HIDDEN_LAYERS):
        r0 = W_H_ROW0 + l * HIDDEN_SIZE
        slab = slab.at[r0:r0 + HIDDEN_SIZE, :HIDDEN_SIZE].set(w_h[l])
    slab = slab.at[W_OUT_ROW0:W_OUT_ROW0 + HIDDEN_SIZE, :OUTPUT_SIZE].set(w_out)
    slab = slab.at[BIAS_ROW0, :HIDDEN_SIZE].set(b_in[0])
    for l in range(NUM_HIDDEN_LAYERS):
        slab = slab.at[BIAS_ROW0 + 1 + l, :HIDDEN_SIZE].set(b_h[l, 0])
    slab = slab.at[BIAS_ROW0 + 1 + NUM_HIDDEN_LAYERS, :OUTPUT_SIZE].set(b_out[0])
    return slab


@functools.partial(jax.jit, static_argnames=("block_rows",))
def _code_labeling_padded(x_rows, slab, *, block_rows):
    """pallas_call over rows-padded x: [Bp, INPUT_SIZE], Bp % 8 == 0. Ragged last block OK."""
    bp = x_rows.shape[0]
    grid = (pl.cdiv(bp, block_rows),)

    # Advisory cost for XLA's scheduler (actual FLOPs, no transcendentals).
    flops = 2 * bp * (INPUT_SIZE * HIDDEN_SIZE
                      + NUM_HIDDEN_LAYERS * HIDDEN_SIZE * HIDDEN_SIZE
                      + HIDDEN_SIZE * OUTPUT_SIZE)
    bytes_accessed = 4 * (x_rows.size + slab.size + bp * OUTPUT_SIZE)

    return pl.pallas_call(
        _mlp_kernel,
        out_shape=jax.ShapeDtypeStruct((bp, OUTPUT_SIZE), jnp.float32),
        grid_spec=pltpu.PrefetchScalarGridSpec(
            num_scalar_prefetch=0,
            grid=grid,
            in_specs=[
                pl.BlockSpec((block_rows, INPUT_SIZE), lambda i: (i, 0)),   # x: batch-tiled
                pl.BlockSpec((SLAB_ROWS, SLAB_LANES), lambda i: (0, 0)),    # params: resident
            ],
            out_specs=pl.BlockSpec((block_rows, OUTPUT_SIZE), lambda i: (i, 0)),
        ),
        compiler_params=pltpu.CompilerParams(
            dimension_semantics=("parallel",),
            vmem_limit_bytes=32 * 1024 * 1024,   # raise v5e's 16 MiB scoped default
        ),
        cost_estimate=pl.CostEstimate(
            flops=flops, transcendentals=0, bytes_accessed=bytes_accessed),
    )(x_rows, slab)


def code_labeling_layer(x, slab, *, max_block_rows=4096):
    """Forward pass. x: [B, INPUT_SIZE] f32, slab: packed params -> [B, OUTPUT_SIZE] f32."""
    b, f = x.shape
    assert f == INPUT_SIZE

    # Rows padded to a multiple of 8 only (no lane padding, no padding to a tile multiple).
    bp = _round_up(b, 8)
    # Tile: multiple of 8, capped; keep grid >= 2 for larger batches (v7x dual-TC sharding).
    tb = min(max_block_rows, max(8, _round_up(pl.cdiv(bp, 2), 8)))

    if bp != b:
        x_rows = jnp.zeros((bp, INPUT_SIZE), jnp.float32).at[:b].set(x)
    else:
        x_rows = x.astype(jnp.float32)

    out = _code_labeling_padded(x_rows, slab, block_rows=tb)
    return out[:b]


def init_params(key):
    """Deterministic parameter init (uniform, PyTorch-Linear-style bounds)."""
    ks = jax.random.split(key, 6)

    def lin_init(kw, kb, fan_in, fan_out):
        bound = 1.0 / jnp.sqrt(fan_in)
        w = jax.random.uniform(kw, (fan_in, fan_out), jnp.float32, -bound, bound)
        b = jax.random.uniform(kb, (1, fan_out), jnp.float32, -bound, bound)
        return w, b

    w_in, b_in = lin_init(ks[0], ks[1], INPUT_SIZE, HIDDEN_SIZE)

    w_h_list, b_h_list = [], []
    kh = jax.random.split(ks[2], 2 * NUM_HIDDEN_LAYERS)
    for l in range(NUM_HIDDEN_LAYERS):
        w, b = lin_init(kh[2 * l], kh[2 * l + 1], HIDDEN_SIZE, HIDDEN_SIZE)
        w_h_list.append(w)
        b_h_list.append(b)
    w_h = jnp.stack(w_h_list, axis=0)                      # [L, H, H]
    b_h = jnp.stack(b_h_list, axis=0)                      # [L, 1, H]

    w_out, b_out = lin_init(ks[3], ks[4], HIDDEN_SIZE, OUTPUT_SIZE)
    return w_in, b_in, w_h, b_h, w_out, b_out


def reference_forward(x, params):
    """Pure-JAX reference of the PyTorch forward (eval mode)."""
    w_in, b_in, w_h, b_h, w_out, b_out = params
    h = jnp.maximum(x @ w_in + b_in, 0.0)
    for l in range(NUM_HIDDEN_LAYERS):
        h = jnp.maximum(h @ w_h[l] + b_h[l], 0.0)
    return h @ w_out + b_out


if __name__ == "__main__":
    key = jax.random.PRNGKey(0)
    k_x, k_x2, k_p = jax.random.split(key, 3)

    params = init_params(k_p)
    slab = pack_params(params)          # packed ONCE at init, reused across calls
    slab = jax.block_until_ready(slab)

    # Small batch (latency path): single grid step.
    x = jax.random.normal(k_x, (BATCH, INPUT_SIZE), dtype=jnp.float32)
    out = jax.block_until_ready(code_labeling_layer(x, slab))
    ref = reference_forward(x, params)
    assert out.shape == (BATCH, OUTPUT_SIZE)
    assert jnp.allclose(out, ref, atol=1e-5, rtol=1e-5), "mismatch vs. reference (B=8)"

    # Slightly larger batch: exercises grid length 2 + ragged last block + row padding.
    x2 = jax.random.normal(k_x2, (20, INPUT_SIZE), dtype=jnp.float32)
    out2 = jax.block_until_ready(code_labeling_layer(x2, slab))
    ref2 = reference_forward(x2, params)
    assert out2.shape == (20, OUTPUT_SIZE)
    assert jnp.allclose(out2, ref2, atol=1e-5, rtol=1e-5), "mismatch vs. reference (B=20)"

    print("KERNEL_OK")
</pallas_src>

<mosaic_0001>
module attributes {stable_mosaic.version = 11 : i64} {
  func.func @_mlp_kernel(%arg0: i32, %arg1: memref<8x32xf32, #tpu.memory_space<vmem>>, %arg2: memref<136x32xf32, #tpu.memory_space<vmem>>, %arg3: memref<8x16xf32, #tpu.memory_space<vmem>>) attributes {dimension_semantics = [#tpu.dimension_semantics<parallel>], iteration_bounds = array<i64: 1>, scalar_prefetch = 0 : i64, scratch_operands = 0 : i64, tpu.core_type = #tpu.core_type<tc>, window_params = [{transform_indices = @transform_0, window_bounds = array<i64: 8, 32>}, {pipeline_mode = #tpu.pipeline_mode<synchronous>, transform_indices = @transform_1, window_bounds = array<i64: 136, 32>}, {transform_indices = @transform_2, window_bounds = array<i64: 8, 16>}]} {
    %c0 = arith.constant 0 : index
    %c0_0 = arith.constant 0 : index
    %0 = vector.load %arg1[%c0, %c0_0] : memref<8x32xf32, #tpu.memory_space<vmem>>, vector<8x32xf32>
    %c128 = arith.constant 128 : index
    %c0_1 = arith.constant 0 : index
    %1 = vector.load %arg2[%c128, %c0_1] : memref<136x32xf32, #tpu.memory_space<vmem>>, vector<8x32xf32>
    %c0_2 = arith.constant 0 : index
    %c0_3 = arith.constant 0 : index
    %2 = vector.load %arg2[%c0_2, %c0_3] : memref<136x32xf32, #tpu.memory_space<vmem>>, vector<32x32xf32>
    %cst = arith.constant dense<0.000000e+00> : vector<8x32xf32>
    %3 = tpu.matmul %0, %2, %cst {dimension_numbers = #tpu.dot_dimension_numbers<[1], [0], [0], [1], [0, 0, 1, 1], [], []>} : vector<8x32xf32>, vector<32x32xf32>, vector<8x32xf32> -> vector<8x32xf32>
    %4 = vector.extract_strided_slice %1 {offsets = [0, 0], sizes = [1, 32], strides = [1, 1]} : vector<8x32xf32> to vector<1x32xf32>
    %5 = vector.broadcast %4 : vector<1x32xf32> to vector<8x32xf32>
    %6 = arith.addf %3, %5 : vector<8x32xf32>
    %cst_4 = arith.constant 0.000000e+00 : f32
    %7 = vector.broadcast %cst_4 : f32 to vector<8x32xf32>
    %8 = arith.maximumf %6, %7 : vector<8x32xf32>
    %c32 = arith.constant 32 : index
    %c0_5 = arith.constant 0 : index
    %9 = vector.load %arg2[%c32, %c0_5] : memref<136x32xf32, #tpu.memory_space<vmem>>, vector<32x32xf32>
    %cst_6 = arith.constant dense<0.000000e+00> : vector<8x32xf32>
    %10 = tpu.matmul %8, %9, %cst_6 {dimension_numbers = #tpu.dot_dimension_numbers<[1], [0], [0], [1], [0, 0, 1, 1], [], []>} : vector<8x32xf32>, vector<32x32xf32>, vector<8x32xf32> -> vector<8x32xf32>
    %11 = vector.extract_strided_slice %1 {offsets = [1, 0], sizes = [1, 32], strides = [1, 1]} : vector<8x32xf32> to vector<1x32xf32>
    %12 = vector.broadcast %11 : vector<1x32xf32> to vector<8x32xf32>
    %13 = arith.addf %10, %12 : vector<8x32xf32>
    %cst_7 = arith.constant 0.000000e+00 : f32
    %14 = vector.broadcast %cst_7 : f32 to vector<8x32xf32>
    %15 = arith.maximumf %13, %14 : vector<8x32xf32>
    %c64 = arith.constant 64 : index
    %c0_8 = arith.constant 0 : index
    %16 = vector.load %arg2[%c64, %c0_8] : memref<136x32xf32, #tpu.memory_space<vmem>>, vector<32x32xf32>
    %cst_9 = arith.constant dense<0.000000e+00> : vector<8x32xf32>
    %17 = tpu.matmul %15, %16, %cst_9 {dimension_numbers = #tpu.dot_dimension_numbers<[1], [0], [0], [1], [0, 0, 1, 1], [], []>} : vector<8x32xf32>, vector<32x32xf32>, vector<8x32xf32> -> vector<8x32xf32>
    %18 = vector.extract_strided_slice %1 {offsets = [2, 0], sizes = [1, 32], strides = [1, 1]} : vector<8x32xf32> to vector<1x32xf32>
    %19 = vector.broadcast %18 : vector<1x32xf32> to vector<8x32xf32>
    %20 = arith.addf %17, %19 : vector<8x32xf32>
    %cst_10 = arith.constant 0.000000e+00 : f32
    %21 = vector.broadcast %cst_10 : f32 to vector<8x32xf32>
    %22 = arith.maximumf %20, %21 : vector<8x32xf32>
    %c96 = arith.constant 96 : index
    %c0_11 = arith.constant 0 : index
    %23 = vector.load %arg2[%c96, %c0_11] : memref<136x32xf32, #tpu.memory_space<vmem>>, vector<32x32xf32>
    %cst_12 = arith.constant dense<0.000000e+00> : vector<8x32xf32>
    %24 = tpu.matmul %22, %23, %cst_12 {dimension_numbers = #tpu.dot_dimension_numbers<[1], [0], [0], [1], [0, 0, 1, 1], [], []>} : vector<8x32xf32>, vector<32x32xf32>, vector<8x32xf32> -> vector<8x32xf32>
    %25 = vector.extract_strided_slice %1 {offsets = [3, 0], sizes = [1, 32], strides = [1, 1]} : vector<8x32xf32> to vector<1x32xf32>
    %26 = vector.broadcast %25 : vector<1x32xf32> to vector<8x32xf32>
    %27 = arith.addf %24, %26 : vector<8x32xf32>
    %28 = vector.extract_strided_slice %27 {offsets = [0, 0], sizes = [8, 16], strides = [1, 1]} : vector<8x32xf32> to vector<8x16xf32>
    %c0_13 = arith.constant 0 : index
    %c0_14 = arith.constant 0 : index
    %29 = vector.load %arg3[%c0_13, %c0_14] : memref<8x16xf32, #tpu.memory_space<vmem>>, vector<8x16xf32>
    tpu.vector_store %arg3[%c0_13, %c0_14], %28 {strides = array<i32>} : memref<8x16xf32, #tpu.memory_space<vmem>>, vector<8x16xf32>,
    return
  }
  func.func @transform_0(%arg0: i32) -> (i32, i32) {
    %c0_i32 = arith.constant 0 : i32
    %c0_i32_0 = arith.constant 0 : i32
    return %arg0, %c0_i32 : i32, i32
  }
  func.func @transform_1(%arg0: i32) -> (i32, i32) {
    %c0_i32 = arith.constant 0 : i32
    %c0_i32_0 = arith.constant 0 : i32
    %c0_i32_1 = arith.constant 0 : i32
    return %c0_i32, %c0_i32_0 : i32, i32
  }
  func.func @transform_2(%arg0: i32) -> (i32, i32) {
    %c0_i32 = arith.constant 0 : i32
    %c0_i32_0 = arith.constant 0 : i32
    return %arg0, %c0_i32 : i32, i32
  }
}

</mosaic_0001>

<bundles_post_ra>
// kernel: _code_labeling_padded.1
= control target key start
LH: loop header
LB: loop body
LE: loop exit
PB: predicated region body
PF: predicated region fallthrough
CT: control target
= control target key end

     0   :  { %v478_v3 = vmov 0.0|0.0   ;;  %vm479_vm0 = vmmov 0   ;;  %v480_v6 = vmov 0.0   ;;  %s571_s0 = inlined_call_operand.vmem [shape: f32[8,32], index: 0, kind: input, shape index: {}]   ;;  %s572_s1 = inlined_call_operand.vmem [shape: f32[136,32], index: 1, kind: input, shape index: {}]   ;;  %s573_s2 = inlined_call_operand.hbm [shape: f32[8,16], index: 2, kind: output, shape index: {}]  }
   0x1   :  { %v14_v0 = vld [vmem:[%s572_s1] sm:$0xff]  ;;  %v15_v1 = vld [vmem:[%s572_s1 + $0x8] sm:$0xff]  ;;  %v16_v2 = vld [vmem:[%s572_s1 + $0x10] sm:$0xff]  ;;  %426 = vmatprep.subr.bf16.mxu0 %v478_v3  ;;  %390 = vmatprep.mubr.msk.f32.mxu0 %vm479_vm0, %v480_v6 }
   0x2   :  { %v427_v4 = vpack.c.bf16 %v15_v1, %v14_v0  ;;  %v17_v5 = vld [vmem:[%s572_s1 + $0x18] sm:$0xff]  ;;  %v97_v7 = vld [vmem:[%s572_s1 + $0x20] sm:$0xff]  ;;  %432 = vmatprep.subr.bf16.mxu1 %v478_v3  ;;  %v98_v8 = vld [vmem:[%s572_s1 + $0x28] sm:$0xff]  ;;  %401 = vmatprep.mubr.msk.f32.mxu1 %vm479_vm0, %v480_v6 }
   0x3   :  { %7 = vsyncpa [#allocation3], 0  ;;  %v430_v9 = vpack.c.bf16 %v17_v5, %v16_v2  ;;  %v433_v10 = vpack.c.bf16 %v98_v8, %v97_v7  ;;  %v12_v11 = vld [vmem:[%s571_s0] sm:$0xff]  ;;  %vm22_vm1 = vcmask 261120   ;;  %v99_v12 = vld [vmem:[%s572_s1 + $0x30] sm:$0xff]  ;;  %v18_v18 = vlaneseq  ;;  %s481_s16 = smov [#allocation2]  }
   0x4   :  { %428 = vmatpush3.bf16.msra.mxu0 %v427_v4  ;;  %v100_v13 = vld [vmem:[%s572_s1 + $0x38] sm:$0xff]  ;;  %v179_v15 = vld [vmem:[%s572_s1 + $0x40] sm:$0xff]  ;;  %v180_v16 = vld [vmem:[%s572_s1 + $0x48] sm:$0xff]  ;;  %s350_s17 = sshll.u32 %s481_s16, 4  ;;  %vm342_vm2 = vcmask 130048   ;;  %s351_s17 = int_to_ptr.vmem [resolvable:$true] %s350_s17 }
   0x5   :  { %429 = vmatprep.subr.bf16.mxu0 %v478_v3  ;;  %434 = vmatpush3.bf16.msra.mxu1 %v433_v10  ;;  %v436_v14 = vpack.c.bf16 %v100_v13, %v99_v12  ;;  %v439_v17 = vpack.c.bf16 %v180_v16, %v179_v15  ;;  %v19_v19 = vshrl.u32 %v18_v18, 7  ;;  %v13_v21 = vld [vmem:[%s572_s1 + $0x80] sm:$0xff]  ;;  %v181_v27 = vld [vmem:[%s572_s1 + $0x50] sm:$0xff]  ;;  %v182_v28 = vld [vmem:[%s572_s1 + $0x58] sm:$0xff]  ;;  %p459_p1 = scmp.lt.s32.totalorder %s351_s17, %s351_s17 }
   0x6   :  { %435 = vmatprep.subr.bf16.mxu1 %v478_v3  ;;  %v442_v29 = vpack.c.bf16 %v182_v28, %v181_v27  ;;  %v261_v30 = vld [vmem:[%s572_s1 + $0x60] sm:$0xff]  ;;  %v262_v31 = vld [vmem:[%s572_s1 + $0x68] sm:$0xff]  ;;  %v263_v39 = vld [vmem:[%s572_s1 + $0x70] sm:$0xff] }
   0x7   :  { %v20_v20 = vsub.s32 0, %v19_v19  ;;  %v445_v32 = vpack.c.bf16 %v262_v31, %v261_v30  ;;  %v103_v33 = vsub.s32 1, %v19_v19  ;;  %v264_v40 = vld [vmem:[%s572_s1 + $0x78] sm:$0xff]  ;;  %v185_v42 = vsub.s32 2, %v19_v19  ;;  %s454_s1 = scalar_lea.vmem %s351_s17, 128 }
   0x8   :  { %431 = vmatpush3.bf16.msra.mxu0 %v430_v9  ;;  %v448_v41 = vpack.c.bf16 %v264_v40, %v263_v39  ;;  %v267_v48 = vsub.s32 3, %v19_v19  ;;  %p455_p0 = scmp.ne.s32.totalorder %s351_s17, %s454_s1  ;;  %p460_p2 = scmp.lt.s32.totalorder %s454_s1, %s454_s1 }
   0x9   :  { %438 = vmatprep.subr.bf16.mxu0 %v478_v3  ;;  %437 = vmatpush3.bf16.msra.mxu1 %v436_v14  ;;  %v21_v22 = vrot.slane %v13_v21, %v20_v20  ;;  %v104_v34 = vrot.slane %v13_v21, %v103_v33  ;;  %v186_v43 = vrot.slane %v13_v21, %v185_v42 }
   0xa   :  { %444 = vmatprep.subr.bf16.mxu1 %v478_v3  ;;  %v268_v49 = vrot.slane %v13_v21, %v267_v48  ;;  %p461_p3 = por %p460_p2, %p459_p1 }
   0xb   :  { %391 = vmatmul.mubr.msk.f32.vlgmr.msra.gmra.mrb[0].mxu0 %vm22_vm1, %v12_v11 }
   0xc   :  { %412 = vmatprep.mubr.msk.f32.mxu0 %vm479_vm0, %v480_v6  ;;  %440 = vmatpush3.bf16.msra.mxu0 %v439_v17  ;;  %p462_p4 = pnand %p461_p3, %p455_p0 }
   0xd   :  { %441 = vmatprep.subr.bf16.mxu0 %v478_v3 }
  0x10   :  { %443 = vmatpush3.bf16.msra.mxu0 %v442_v29 }
  0xde   :  { %v92_v23 = vpop.f32.mrb[0].mxu0 }
  0xdf   :  { %v93_v24 = vadd.f32 %v92_v23, %v21_v22  ;;  %v392_v25 = vpop.f32.mrb[1].mxu0 }
  0xe1   :  { %v96_v26 = vmax.f32 %v93_v24, 0.0 }
  0xe3   :  { %402 = vmatmul.mubr.msk.f32.vlgmr.msra.gmra.mrb[0].mxu1 %vm22_vm1, %v96_v26 }
  0xe4   :  { %423 = vmatprep.mubr.msk.f32.mxu1 %vm479_vm0, %v480_v6  ;;  %446 = vmatpush3.bf16.msra.mxu1 %v445_v32 }
  0xe5   :  { %447 = vmatprep.subr.bf16.mxu1 %v478_v3 }
  0xe8   :  { %449 = vmatpush3.bf16.msra.mxu1 %v448_v41 }
 0x1b6   :  { %v174_v35 = vpop.f32.mrb[0].mxu1 }
 0x1b7   :  { %v175_v36 = vadd.f32 %v174_v35, %v104_v34  ;;  %v403_v37 = vpop.f32.mrb[1].mxu1 }
 0x1b9   :  { %v178_v38 = vmax.f32 %v175_v36, 0.0 }
 0x1bb   :  { %413 = vmatmul.mubr.msk.f32.vlgmr.msra.gmra.mrb[2].mxu0 %vm22_vm1, %v178_v38 }
 0x28e   :  { %v256_v44 = vpop.f32.mrb[2].mxu0 }
 0x28f   :  { %v257_v45 = vadd.f32 %v256_v44, %v186_v43  ;;  %v414_v46 = vpop.f32.mrb[3].mxu0 }
 0x291   :  { %v260_v47 = vmax.f32 %v257_v45, 0.0 }
 0x293   :  { %424 = vmatmul.mubr.msk.f32.vlgmr.msra.gmra.mrb[2].mxu1 %vm22_vm1, %v260_v47 }
 0x366   :  { %v338_v50 = vpop.f32.mrb[2].mxu1 }
 0x367   :  { %v339_v51 = vadd.f32 %v338_v50, %v268_v49  ;;  %v425_v52 = vpop.f32.mrb[3].mxu1 }
 0x369   :  { %343 = vst.msk [vmem:[#allocation2] sm:$0xff] %vm342_vm2, %v339_v51 }
 0x36a   :  { %465 = shalt.err (!%p462_p4)
}
 0x36b   :  { %s466_s20 = scalar_lea.hbm %s573_s2, 128 }
 0x36c   :  { %p467_p5 = scmp.ne.s32.totalorder %s573_s2, %s466_s20  ;;  %p470_p6 = scmp.lt.u32.totalorder %s466_s20, %s573_s2 }
 0x36e   :  { %p472_p7 = pnand %p470_p6, %p467_p5 }
 0x370   :  { %475 = shalt.err (!%p472_p7)
}
 0x371   :  { %353 = dma.vmem_to_hbm [thread:$0]  %s351_s17, 128, %s573_s2, [#allocation3]  }
 0x372   :  { %476 = dma.done.wait [#allocation3], 128  }
 0x373   :  { %477 = vsyncadd [#allocation3], 4294967168 }
 0x374   :  { %357 = vsyncpa [#allocation3], 1 }

</bundles_post_ra>
